<compile_context>
chip_gen: v7x
topology: tpu7x:2x2x1
jax: 0.10.0
libtpu: 0.0.40
codegen_flags: <defaults>
</compile_context>

<pallas_src>
import numpy as np
import jax
import jax.numpy as jnp
from jax.experimental import pallas as pl
from jax.experimental.pallas import tpu as pltpu


# -----------------------------------------------------------------------------
# Pallas kernel: h(z) = num(z)/den(z) on z = exp(-j*omega), then out = sf * h.
# All planes are (R, C) f32 in the packed (batch*P, freq/P) layout; coefficient
# columns are (R, 1) f32 (per-row constants, lane-broadcast in the multiplies).
# -----------------------------------------------------------------------------
def _spectral_filter_kernel(zr_ref, zi_ref,
                            d0_ref, d1_ref, d2_ref,
                            n0_ref, n1_ref, n2_ref,
                            sfr_ref, sfi_ref,
                            or_ref, oi_ref):
    # Hoisted trig tables (no cos/sin in the kernel).
    zr = zr_ref[...]
    zi = zi_ref[...]
    # z^2 on the unit circle: cheap VALU work, avoids 2 extra DMA'd planes.
    z2r = zr * zr - zi * zi
    z2i = 2.0 * zr * zi

    d0 = d0_ref[...]; d1 = d1_ref[...]; d2 = d2_ref[...]
    n0 = n0_ref[...]; n1 = n1_ref[...]; n2 = n2_ref[...]

    # batch_polyval (Horner, degree 2): c(z) = c0*z^2 + c1*z + c2
    a_re = d0 * z2r + d1 * zr + d2
    a_im = d0 * z2i + d1 * zi
    b_re = n0 * z2r + n1 * zr + n2
    b_im = n0 * z2i + n1 * zi

    # h = num/den : complex divide with the reciprocal on the EUP slot.
    inv_a2 = pl.reciprocal(a_re * a_re + a_im * a_im, approx=True)
    h_re = (b_re * a_re + b_im * a_im) * inv_a2
    h_im = (b_im * a_re - b_re * a_im) * inv_a2

    # out_fft = state_fft * h
    s_re = sfr_ref[...]
    s_im = sfi_ref[...]
    or_ref[...] = s_re * h_re - s_im * h_im
    oi_ref[...] = s_re * h_im + s_im * h_re


_LANE = 128
_TILE_CANDIDATES = (1024, 512, 384, 256, 128)   # C is always a multiple of 128


def spectral_filter_pallas(num, den, sf_re, sf_im):
    """out_fft = state_fft * num(z)/den(z), z = exp(-j*linspace(0, pi, F)).

    num/den: (B, 3) f32 polynomial coefficients.
    sf_re/sf_im: (B, F) f32 re/im planes of the state rfft.
    Returns (B, F) re/im planes of the filtered spectrum.
    """
    B, F = sf_re.shape
    assert F >= 2, "state_size must be >= 2 (F = state_size//2 + 1 >= 2)"

    # --- fold the short batch axis into the 8 f32 sublanes -------------------
    P = 8 // B if (B < 8 and 8 % B == 0) else 1
    R = B * P

    # --- pad the frequency axis so the packed rows are lane-dense (x128) -----
    chunk = P * _LANE
    Fp = ((F + chunk - 1) // chunk) * chunk
    C = Fp // P
    tile = next(t for t in _TILE_CANDIDATES if C % t == 0)
    n_tiles = C // tile
    pad = Fp - F

    sfr = jnp.pad(sf_re, ((0, 0), (0, pad))).reshape(R, C)
    sfi = jnp.pad(sf_im, ((0, 0), (0, pad))).reshape(R, C)

    # --- hoisted trig: z = exp(-j*omega), omega_k = pi*k/(F-1) ----------------
    k = jnp.arange(Fp, dtype=jnp.float32)
    omega = (jnp.pi / (F - 1)) * k
    zr = jnp.tile(jnp.cos(omega).reshape(P, C), (B, 1))
    zi = jnp.tile((-jnp.sin(omega)).reshape(P, C), (B, 1))

    # --- pre-sliced coefficient columns, replicated to the packed row layout --
    def col(c, i):
        return jnp.repeat(c[:, i:i + 1].astype(jnp.float32), P, axis=0)
    d0, d1, d2 = col(den, 0), col(den, 1), col(den, 2)
    n0, n1, n2 = col(num, 0), col(num, 1), col(num, 2)

    plane = pl.BlockSpec((R, tile), lambda i: (0, i))
    coeff = pl.BlockSpec((R, 1), lambda i: (0, 0))     # resident across the grid

    o_re, o_im = pl.pallas_call(
        _spectral_filter_kernel,
        out_shape=(jax.ShapeDtypeStruct((R, C), jnp.float32),
                   jax.ShapeDtypeStruct((R, C), jnp.float32)),
        grid=(n_tiles,),
        in_specs=[plane, plane,
                  coeff, coeff, coeff, coeff, coeff, coeff,
                  plane, plane],
        out_specs=(plane, plane),
        compiler_params=pltpu.CompilerParams(
            dimension_semantics=("parallel",)),
    )(zr, zi, d0, d1, d2, n0, n1, n2, sfr, sfi)

    o_re = o_re.reshape(B, Fp)[:, :F]
    o_im = o_im.reshape(B, Fp)[:, :F]
    return o_re, o_im


# -----------------------------------------------------------------------------
# JAX port of PreampGainLayer (forward only; zeroed state as after reset_states)
# -----------------------------------------------------------------------------
class PreampGainLayerPallas:
    RG = 1_000_000.0
    R1 = 470_000.0
    C1 = 3.3e-9
    C2 = 1e-9

    def __init__(self, sr=44100, state_size=4096, n_targets=1, batch_size=4):
        assert state_size >= 2
        self.sr = sr
        self.T = 1.0 / sr            # trapezoidal step of PreampGain
        self.state_size = state_size
        self.batch_size = batch_size
        self.n_targets = n_targets

        # trainable scalars (torch init: zeros) -> sigmoid(0) = 0.5 -> factors 1.0
        self.alpha_rg = jnp.zeros((1,), jnp.float32)
        self.alpha_r1 = jnp.zeros((1,), jnp.float32)
        self.alpha_c1 = jnp.zeros((1,), jnp.float32)
        self.alpha_c2 = jnp.zeros((1,), jnp.float32)

        # ---- synthetic PreampGain.get_matrices() ----------------------------
        # TODO(synk): real PreampGain netlist unavailable; use a consistent,
        # well-posed RC gain stage: vin --R1-- n1 --C1-- n2 --potA-- n3(=out),
        # potB: n3--gnd, C2: n3--gnd.  Every cap has a resistive discharge
        # path, so the discrete poles stay strictly inside the unit circle.
        f64 = np.float64
        self.Nr = np.array([[1., -1., 0., 0.]], f64)                  # R1: n0-n1
        self.Nx = np.array([[0., 1., -1., 0.],                        # C1: n1-n2
                            [0., 0., 0., 1.]], f64)                   # C2: n3-gnd
        self.Nv = np.array([[0., 0., 1., -1.],                        # potA: n2-n3
                            [0., 0., 0., 1.]], f64)                   # potB: n3-gnd
        self.Nu = np.array([[1., 0., 0., 0.]], f64)                   # vin at n0
        self.No = np.array([[0., 0., 0., 1.]], f64)                   # vout = v(n3)
        self.Z = np.eye(2, dtype=f64)

        n_vsrcs = self.Nu.shape[0]
        n_nodes = self.Nu.shape[1]
        self.Nvp = np.concatenate([self.Nv, np.zeros((2, n_vsrcs))], axis=1)
        self.Nxp = np.concatenate([self.Nx, np.zeros((2, n_vsrcs))], axis=1)
        self.Nop = np.concatenate([self.No, np.zeros((1, n_vsrcs))], axis=1)
        self.Nup = np.concatenate([np.zeros((n_nodes, n_vsrcs)),
                                   np.eye(n_vsrcs)], axis=0)

        self._update_static_state_space()

    # -------------------------------------------------------------------
    @staticmethod
    def _sigmoid_np(a):
        return 1.0 / (1.0 + np.exp(-float(a[0])))

    def _update_static_state_space(self):
        """Input-independent DK matrices (update_resistors/caps/state_space),
        computed in float64 like the torch module's double path."""
        RG = (0.9 + self._sigmoid_np(self.alpha_rg) * 0.2) * self.RG
        R1 = (0.99 + self._sigmoid_np(self.alpha_r1) * 0.02) * self.R1
        C1 = (0.9 + self._sigmoid_np(self.alpha_c1) * 0.2) * self.C1
        C2 = (0.9 + self._sigmoid_np(self.alpha_c2) * 0.2) * self.C2
        self._RG_val = float(RG)

        Gr = np.array([[1.0 / R1]])
        Gx = np.diag([2.0 * C1 / self.T, 2.0 * C2 / self.T])

        n_vsrc = self.Nu.shape[0]
        G = self.Nr.T @ Gr @ self.Nr + self.Nx.T @ Gx @ self.Nx
        So = np.block([[G, self.Nu.T],
                       [self.Nu, np.zeros((n_vsrc, n_vsrc))]])
        So_inv = np.linalg.inv(So)

        Q = self.Nvp @ So_inv @ self.Nvp.T           # matrices[9] analogue
        Ux = self.Nxp @ So_inv @ self.Nvp.T
        Uo = self.Nop @ So_inv @ self.Nvp.T
        Uu = self.Nup.T @ So_inv @ self.Nvp.T
        ZGx = 2.0 * self.Z @ Gx
        Ao = ZGx @ self.Nxp @ So_inv @ self.Nxp.T - self.Z
        Bo = ZGx @ self.Nxp @ So_inv @ self.Nup
        Do = self.Nop @ So_inv @ self.Nxp.T
        Eo = self.Nop @ So_inv @ self.Nup

        as_f32 = lambda m: jnp.asarray(m, jnp.float32)
        self.Q = as_f32(Q)
        self.Ux = as_f32(Ux)
        self.Uo = as_f32(Uo)
        self.Uu = as_f32(Uu)
        self.ZGxUx = as_f32(ZGx @ Ux)
        self.Ao = as_f32(Ao)
        self.Bo = as_f32(Bo)
        self.Do = as_f32(Do)
        self.Eo = as_f32(Eo)

    # -------------------------------------------------------------------
    def _cond_block(self, cond):
        # TODO(synk): CondBlockTone internals unavailable; deterministic
        # log-taper ('log' pot_char) mapping, clipped away from the end stops
        # so neither pot half degenerates to a 0-ohm short.
        c = jnp.clip(cond[:, 0], 0.0, 1.0)
        pot = (jnp.power(10.0, c) - 1.0) / 9.0
        pot = jnp.clip(pot, 0.01, 0.99)
        return (pot,)

    @staticmethod
    def _inv2x2(M):
        a = M[:, 0, 0]; b = M[:, 0, 1]; c = M[:, 1, 0]; d = M[:, 1, 1]
        det = a * d - b * c
        inv = jnp.stack([jnp.stack([d, -b], -1),
                         jnp.stack([-c, a], -1)], -2)
        return inv / det[:, None, None]

    def _state_space(self, pot):
        # update_pots: Rv from the pot position, RvQ = inv(Rv + Q)
        zero = jnp.zeros_like(pot)
        Rv = jnp.stack([jnp.stack([(1.0 - pot) * self._RG_val, zero], -1),
                        jnp.stack([zero, pot * self._RG_val], -1)], -2)
        RvQ = self._inv2x2(Rv + self.Q[None])          # (B, 2, 2)

        # update_state_space (batched Woodbury correction, f32)
        A = self.Ao[None] - self.ZGxUx[None] @ RvQ @ self.Ux.T[None]    # (B,2,2)
        Bm = self.Bo[None] - self.ZGxUx[None] @ RvQ @ self.Uu.T[None]   # (B,2,1)
        D = self.Do[None] - self.Uo[None] @ RvQ @ self.Ux.T[None]       # (B,1,2)
        E = self.Eo[None] - self.Uo[None] @ RvQ @ self.Uu.T[None]       # (B,1,1)
        return A, Bm, D, E

    @staticmethod
    def _poly2(M):
        # batch_poly(eigvals(M)) for 2x2 M == characteristic polynomial
        # coefficients [1, -trace, det] (exact, no eigendecomposition needed).
        tr = M[:, 0, 0] + M[:, 1, 1]
        det = M[:, 0, 0] * M[:, 1, 1] - M[:, 0, 1] * M[:, 1, 0]
        return jnp.stack([jnp.ones_like(tr), -tr, det], axis=1)

    # -------------------------------------------------------------------
    def forward(self, x, cond, use_pallas=True):
        pot = self._cond_block(cond)[0]
        A, Bm, D, E = self._state_space(pot)
        den = self._poly2(A)
        num = self._poly2(A - Bm @ D) + (E[:, :, 0] - 1.0) * den

        B, seq, _ = x.shape
        F = self.state_size // 2 + 1
        # reset_states() -> zero state; then slide x in (freq_filt)
        state = jnp.zeros((B, self.state_size, 1), jnp.float32)
        state = jnp.concatenate([state[:, seq:, :], x], axis=1)
        # torch uses float64/complex128 here; TPU FFT is f32/complex64.
        sf = jnp.fft.rfft(state[..., 0], axis=1)          # (B, F) complex64
        sf_re = jnp.real(sf).astype(jnp.float32)
        sf_im = jnp.imag(sf).astype(jnp.float32)

        if use_pallas:
            o_re, o_im = spectral_filter_pallas(num, den, sf_re, sf_im)
        else:  # pure-JAX reference path
            z = jnp.exp(-1j * jnp.linspace(0.0, jnp.pi, F)).astype(jnp.complex64)
            a = den[:, 0:1] * z[None] ** 2 + den[:, 1:2] * z[None] + den[:, 2:3]
            b = num[:, 0:1] * z[None] ** 2 + num[:, 1:2] * z[None] + num[:, 2:3]
            o = sf * (b / a)
            o_re, o_im = jnp.real(o), jnp.imag(o)

        out = jnp.fft.irfft(o_re + 1j * o_im, n=self.state_size, axis=1)
        return out.astype(jnp.float32)[:, -seq:, None]

    __call__ = forward


if __name__ == "__main__":
    key = jax.random.PRNGKey(0)
    kx, kc = jax.random.split(key)
    B, seq, state_size = 4, 64, 2048          # F = 1025 -> 5 parallel grid tiles
    x = 0.1 * jax.random.normal(kx, (B, seq, 1), dtype=jnp.float32)
    cond = jax.random.uniform(kc, (B, 1), dtype=jnp.float32)

    layer = PreampGainLayerPallas(sr=44100, state_size=state_size,
                                  n_targets=1, batch_size=B)

    out = jax.block_until_ready(layer(x, cond, use_pallas=True))
    ref = jax.block_until_ready(layer(x, cond, use_pallas=False))

    assert out.shape == (B, seq, 1), out.shape
    assert bool(jnp.all(jnp.isfinite(out))), "non-finite output"
    scale = float(jnp.max(jnp.abs(ref))) + 1e-6
    max_err = float(jnp.max(jnp.abs(out - ref))) / scale
    assert max_err < 2e-2, f"mismatch vs reference: {max_err}"
    print("KERNEL_OK")
</pallas_src>

<mosaic_0001>
module attributes {stable_mosaic.version = 11 : i64} {
  func.func @_spectral_filter_kernel(%arg0: i32, %arg1: memref<8x128xf32, #tpu.memory_space<vmem>>, %arg2: memref<8x128xf32, #tpu.memory_space<vmem>>, %arg3: memref<8x1xf32, #tpu.memory_space<vmem>>, %arg4: memref<8x1xf32, #tpu.memory_space<vmem>>, %arg5: memref<8x1xf32, #tpu.memory_space<vmem>>, %arg6: memref<8x1xf32, #tpu.memory_space<vmem>>, %arg7: memref<8x1xf32, #tpu.memory_space<vmem>>, %arg8: memref<8x1xf32, #tpu.memory_space<vmem>>, %arg9: memref<8x128xf32, #tpu.memory_space<vmem>>, %arg10: memref<8x128xf32, #tpu.memory_space<vmem>>, %arg11: memref<8x128xf32, #tpu.memory_space<vmem>>, %arg12: memref<8x128xf32, #tpu.memory_space<vmem>>) attributes {dimension_semantics = [#tpu.dimension_semantics<parallel>], iteration_bounds = array<i64: 5>, scalar_prefetch = 0 : i64, scratch_operands = 0 : i64, tpu.core_type = #tpu.core_type<tc>, window_params = [{transform_indices = @transform_0, window_bounds = array<i64: 8, 128>}, {transform_indices = @transform_1, window_bounds = array<i64: 8, 128>}, {pipeline_mode = #tpu.pipeline_mode<synchronous>, transform_indices = @transform_2, window_bounds = array<i64: 8, 1>}, {pipeline_mode = #tpu.pipeline_mode<synchronous>, transform_indices = @transform_3, window_bounds = array<i64: 8, 1>}, {pipeline_mode = #tpu.pipeline_mode<synchronous>, transform_indices = @transform_4, window_bounds = array<i64: 8, 1>}, {pipeline_mode = #tpu.pipeline_mode<synchronous>, transform_indices = @transform_5, window_bounds = array<i64: 8, 1>}, {pipeline_mode = #tpu.pipeline_mode<synchronous>, transform_indices = @transform_6, window_bounds = array<i64: 8, 1>}, {pipeline_mode = #tpu.pipeline_mode<synchronous>, transform_indices = @transform_7, window_bounds = array<i64: 8, 1>}, {transform_indices = @transform_8, window_bounds = array<i64: 8, 128>}, {transform_indices = @transform_9, window_bounds = array<i64: 8, 128>}, {transform_indices = @transform_10, window_bounds = array<i64: 8, 128>}, {transform_indices = @transform_11, window_bounds = array<i64: 8, 128>}]} {
    %c0 = arith.constant 0 : index
    %c0_0 = arith.constant 0 : index
    %0 = vector.load %arg1[%c0, %c0_0] : memref<8x128xf32, #tpu.memory_space<vmem>>, vector<8x128xf32>
    %c0_1 = arith.constant 0 : index
    %c0_2 = arith.constant 0 : index
    %1 = vector.load %arg2[%c0_1, %c0_2] : memref<8x128xf32, #tpu.memory_space<vmem>>, vector<8x128xf32>
    %2 = arith.mulf %0, %0 : vector<8x128xf32>
    %3 = arith.mulf %1, %1 : vector<8x128xf32>
    %4 = arith.subf %2, %3 : vector<8x128xf32>
    %cst = arith.constant 2.000000e+00 : f32
    %5 = vector.broadcast %cst : f32 to vector<8x128xf32>
    %6 = arith.mulf %5, %0 : vector<8x128xf32>
    %7 = arith.mulf %6, %1 : vector<8x128xf32>
    %c0_3 = arith.constant 0 : index
    %c0_4 = arith.constant 0 : index
    %8 = vector.load %arg3[%c0_3, %c0_4] : memref<8x1xf32, #tpu.memory_space<vmem>>, vector<8x1xf32>
    %c0_5 = arith.constant 0 : index
    %c0_6 = arith.constant 0 : index
    %9 = vector.load %arg4[%c0_5, %c0_6] : memref<8x1xf32, #tpu.memory_space<vmem>>, vector<8x1xf32>
    %c0_7 = arith.constant 0 : index
    %c0_8 = arith.constant 0 : index
    %10 = vector.load %arg5[%c0_7, %c0_8] : memref<8x1xf32, #tpu.memory_space<vmem>>, vector<8x1xf32>
    %c0_9 = arith.constant 0 : index
    %c0_10 = arith.constant 0 : index
    %11 = vector.load %arg6[%c0_9, %c0_10] : memref<8x1xf32, #tpu.memory_space<vmem>>, vector<8x1xf32>
    %c0_11 = arith.constant 0 : index
    %c0_12 = arith.constant 0 : index
    %12 = vector.load %arg7[%c0_11, %c0_12] : memref<8x1xf32, #tpu.memory_space<vmem>>, vector<8x1xf32>
    %c0_13 = arith.constant 0 : index
    %c0_14 = arith.constant 0 : index
    %13 = vector.load %arg8[%c0_13, %c0_14] : memref<8x1xf32, #tpu.memory_space<vmem>>, vector<8x1xf32>
    %14 = vector.broadcast %8 : vector<8x1xf32> to vector<8x128xf32>
    %15 = arith.mulf %14, %4 : vector<8x128xf32>
    %16 = vector.broadcast %9 : vector<8x1xf32> to vector<8x128xf32>
    %17 = arith.mulf %16, %0 : vector<8x128xf32>
    %18 = arith.addf %15, %17 : vector<8x128xf32>
    %19 = vector.broadcast %10 : vector<8x1xf32> to vector<8x128xf32>
    %20 = arith.addf %18, %19 : vector<8x128xf32>
    %21 = vector.broadcast %8 : vector<8x1xf32> to vector<8x128xf32>
    %22 = arith.mulf %21, %7 : vector<8x128xf32>
    %23 = vector.broadcast %9 : vector<8x1xf32> to vector<8x128xf32>
    %24 = arith.mulf %23, %1 : vector<8x128xf32>
    %25 = arith.addf %22, %24 : vector<8x128xf32>
    %26 = vector.broadcast %11 : vector<8x1xf32> to vector<8x128xf32>
    %27 = arith.mulf %26, %4 : vector<8x128xf32>
    %28 = vector.broadcast %12 : vector<8x1xf32> to vector<8x128xf32>
    %29 = arith.mulf %28, %0 : vector<8x128xf32>
    %30 = arith.addf %27, %29 : vector<8x128xf32>
    %31 = vector.broadcast %13 : vector<8x1xf32> to vector<8x128xf32>
    %32 = arith.addf %30, %31 : vector<8x128xf32>
    %33 = vector.broadcast %11 : vector<8x1xf32> to vector<8x128xf32>
    %34 = arith.mulf %33, %7 : vector<8x128xf32>
    %35 = vector.broadcast %12 : vector<8x1xf32> to vector<8x128xf32>
    %36 = arith.mulf %35, %1 : vector<8x128xf32>
    %37 = arith.addf %34, %36 : vector<8x128xf32>
    %38 = arith.mulf %20, %20 : vector<8x128xf32>
    %39 = arith.mulf %25, %25 : vector<8x128xf32>
    %40 = arith.addf %38, %39 : vector<8x128xf32>
    %41 = tpu.reciprocal %40 {approx = true} : vector<8x128xf32> -> vector<8x128xf32>
    %42 = arith.mulf %32, %20 : vector<8x128xf32>
    %43 = arith.mulf %37, %25 : vector<8x128xf32>
    %44 = arith.addf %42, %43 : vector<8x128xf32>
    %45 = arith.mulf %44, %41 : vector<8x128xf32>
    %46 = arith.mulf %37, %20 : vector<8x128xf32>
    %47 = arith.mulf %32, %25 : vector<8x128xf32>
    %48 = arith.subf %46, %47 : vector<8x128xf32>
    %49 = arith.mulf %48, %41 : vector<8x128xf32>
    %c0_15 = arith.constant 0 : index
    %c0_16 = arith.constant 0 : index
    %50 = vector.load %arg9[%c0_15, %c0_16] : memref<8x128xf32, #tpu.memory_space<vmem>>, vector<8x128xf32>
    %c0_17 = arith.constant 0 : index
    %c0_18 = arith.constant 0 : index
    %51 = vector.load %arg10[%c0_17, %c0_18] : memref<8x128xf32, #tpu.memory_space<vmem>>, vector<8x128xf32>
    %52 = arith.mulf %50, %45 : vector<8x128xf32>
    %53 = arith.mulf %51, %49 : vector<8x128xf32>
    %54 = arith.subf %52, %53 : vector<8x128xf32>
    %c0_19 = arith.constant 0 : index
    %c0_20 = arith.constant 0 : index
    %55 = vector.load %arg11[%c0_19, %c0_20] : memref<8x128xf32, #tpu.memory_space<vmem>>, vector<8x128xf32>
    tpu.vector_store %arg11[%c0_19, %c0_20], %54 {strides = array<i32>} : memref<8x128xf32, #tpu.memory_space<vmem>>, vector<8x128xf32>,
    %56 = arith.mulf %50, %49 : vector<8x128xf32>
    %57 = arith.mulf %51, %45 : vector<8x128xf32>
    %58 = arith.addf %56, %57 : vector<8x128xf32>
    %c0_21 = arith.constant 0 : index
    %c0_22 = arith.constant 0 : index
    %59 = vector.load %arg12[%c0_21, %c0_22] : memref<8x128xf32, #tpu.memory_space<vmem>>, vector<8x128xf32>
    tpu.vector_store %arg12[%c0_21, %c0_22], %58 {strides = array<i32>} : memref<8x128xf32, #tpu.memory_space<vmem>>, vector<8x128xf32>,
    return
  }
  func.func @transform_0(%arg0: i32) -> (i32, i32) {
    %c0_i32 = arith.constant 0 : i32
    %c0_i32_0 = arith.constant 0 : i32
    return %c0_i32, %arg0 : i32, i32
  }
  func.func @transform_1(%arg0: i32) -> (i32, i32) {
    %c0_i32 = arith.constant 0 : i32
    %c0_i32_0 = arith.constant 0 : i32
    return %c0_i32, %arg0 : i32, i32
  }
  func.func @transform_2(%arg0: i32) -> (i32, i32) {
    %c0_i32 = arith.constant 0 : i32
    %c0_i32_0 = arith.constant 0 : i32
    %c0_i32_1 = arith.constant 0 : i32
    return %c0_i32, %c0_i32_0 : i32, i32
  }
  func.func @transform_3(%arg0: i32) -> (i32, i32) {
    %c0_i32 = arith.constant 0 : i32
    %c0_i32_0 = arith.constant 0 : i32
    %c0_i32_1 = arith.constant 0 : i32
    return %c0_i32, %c0_i32_0 : i32, i32
  }
  func.func @transform_4(%arg0: i32) -> (i32, i32) {
    %c0_i32 = arith.constant 0 : i32
    %c0_i32_0 = arith.constant 0 : i32
    %c0_i32_1 = arith.constant 0 : i32
    return %c0_i32, %c0_i32_0 : i32, i32
  }
  func.func @transform_5(%arg0: i32) -> (i32, i32) {
    %c0_i32 = arith.constant 0 : i32
    %c0_i32_0 = arith.constant 0 : i32
    %c0_i32_1 = arith.constant 0 : i32
    return %c0_i32, %c0_i32_0 : i32, i32
  }
  func.func @transform_6(%arg0: i32) -> (i32, i32) {
    %c0_i32 = arith.constant 0 : i32
    %c0_i32_0 = arith.constant 0 : i32
    %c0_i32_1 = arith.constant 0 : i32
    return %c0_i32, %c0_i32_0 : i32, i32
  }
  func.func @transform_7(%arg0: i32) -> (i32, i32) {
    %c0_i32 = arith.constant 0 : i32
    %c0_i32_0 = arith.constant 0 : i32
    %c0_i32_1 = arith.constant 0 : i32
    return %c0_i32, %c0_i32_0 : i32, i32
  }
  func.func @transform_8(%arg0: i32) -> (i32, i32) {
    %c0_i32 = arith.constant 0 : i32
    %c0_i32_0 = arith.constant 0 : i32
    return %c0_i32, %arg0 : i32, i32
  }
  func.func @transform_9(%arg0: i32) -> (i32, i32) {
    %c0_i32 = arith.constant 0 : i32
    %c0_i32_0 = arith.constant 0 : i32
    return %c0_i32, %arg0 : i32, i32
  }
  func.func @transform_10(%arg0: i32) -> (i32, i32) {
    %c0_i32 = arith.constant 0 : i32
    %c0_i32_0 = arith.constant 0 : i32
    return %c0_i32, %arg0 : i32, i32
  }
  func.func @transform_11(%arg0: i32) -> (i32, i32) {
    %c0_i32 = arith.constant 0 : i32
    %c0_i32_0 = arith.constant 0 : i32
    return %c0_i32, %arg0 : i32, i32
  }
}

</mosaic_0001>

<bundles_post_ra>
// kernel: tpu_custom_call.1
= control target key start
LH: loop header
LB: loop body
LE: loop exit
PB: predicated region body
PF: predicated region fallthrough
CT: control target
= control target key end

     0   :  { %s1331_s0 = inlined_call_operand.vmem [shape: f32[8,640], index: 0, kind: input, shape index: {}]   ;;  %s1332_s1 = inlined_call_operand.hbm [shape: f32[8,640], index: 1, kind: input, shape index: {}]   ;;  %s1333_s2 = inlined_call_operand.vmem [shape: f32[8,1], index: 2, kind: input, shape index: {}]   ;;  %s1334_s3 = inlined_call_operand.vmem [shape: f32[8,1], index: 3, kind: input, shape index: {}]   ;;  %s1335_s4 = inlined_call_operand.vmem [shape: f32[8,1], index: 4, kind: input, shape index: {}]   ;;  %s1336_s5 = inlined_call_operand.vmem [shape: f32[8,1], index: 5, kind: input, shape index: {}]   ;;  %s1337_s6 = inlined_call_operand.vmem [shape: f32[8,1], index: 6, kind: input, shape index: {}]   ;;  %s1338_s7 = inlined_call_operand.vmem [shape: f32[8,1], index: 7, kind: input, shape index: {}]   ;;  %s1339_s8 = inlined_call_operand.vmem [shape: f32[8,640], index: 8, kind: input, shape index: {}]   ;;  %s1340_s9 = inlined_call_operand.hbm [shape: f32[8,640], index: 9, kind: input, shape index: {}]   ;;  %s1341_s10 = inlined_call_operand.hbm [shape: f32[8,640], index: 10, kind: output, shape index: {0}]   ;;  %s1342_s11 = inlined_call_operand.hbm [shape: f32[8,640], index: 11, kind: output, shape index: {1}]  }
   0x1   :  { %1351 = sst [smem:[#allocation18_spill]] %s1332_s1 }
   0x2   :  { %17 = vsyncpa [#allocation3], 0 }
   0x3   :  { %19 = vsyncpa [#allocation3 + $0x1], 0 }
   0x4   :  { %20 = vsyncpa [#allocation6], 0 }
   0x5   :  { %22 = vsyncpa [#allocation6 + $0x1], 0 }
   0x6   :  { %23 = vsyncpa [#allocation4], 0 }
   0x7   :  { %25 = vsyncpa [#allocation4 + $0x1], 0 }
   0x8   :  { %26 = vsyncpa [#allocation9], 0 }
   0x9   :  { %28 = vsyncpa [#allocation9 + $0x1], 0  ;;  %s1054_s17 = smov 0   ;;  %s1056_s18 = smov 0  }
   0xa   :  { %s1058_s19 = smov 0   ;;  %s1060_s20 = smov 0  }
   0xb LB: > { %1352 = sst [smem:[#allocation14_spill]] %s983_s19  ;;  %s1075_s21 = sadd.s32 4294967295, %s987_s20   ;;  %s987_s20 = sphi %s1060_s20, %s1372_s20   ;;  %s983_s19 = sphi %s1058_s19, %s1374_s19   ;;  %s979_s18 = sphi %s1056_s18, %s1376_s18   ;;  %s975_s17 = sphi %s1054_s17, %s1375_s17  }
   0xc   : > { %s744_s22 = sadd.s32 4294967294, %s987_s20   ;;  %s1079_s23 = sadd.s32 1, %s987_s20  }
   0xd   : > { %1353 = sst [smem:[#allocation15_spill]] %s1079_s23  ;;  %s67_s24 = sadd.s32 1, %s983_s19 }
   0xe   : > { %s64_s25 = ssub.s32 %s987_s20, %s1079_s23  ;;  %p74_p0 = scmp.ne.s32.totalorder %s983_s19, %s979_s18 }
   0xf   : > { %p65_p1 = scmp.eq.s32.totalorder %s64_s25, 0  ;;  %p75_p2 = scmp.eq.s32.totalorder %s987_s20, 0 }
  0x10   : > { %p80_p3 = scmp.ne.s32.totalorder %s979_s18, %s975_s17  ;;  %p81_p4 = scmp.eq.s32.totalorder %s1075_s21, 0 }
  0x11   : > { %s1091_s26 = scalar_select %p65_p1, %s983_s19, %s67_s24  }
  0x12   : > { %p1093_p5 = por %p75_p2, %p74_p0  ;;  %p1097_p6 = por %p81_p4, %p80_p3 }
  0x13   : > { %1354 = sst [smem:[#allocation16_spill]] %s1091_s26  ;;  %p282_p7 = scmp.eq.s32.totalorder %s1075_s21, 4 }
  0x14   : > { %s1356_s28 = scalar_select %p1097_p6, 1, 0 }
  0x15   : > { %p288_p8 = scmp.eq.s32.totalorder %s744_s22, 4  ;;  %p786_p9 = scmp.lt.s32.totalorder %s987_s20, 5 }
  0x16   : > { %p1103_p10 = por %p282_p7, %p74_p0  ;;  %s1112_s12 = sand.u32 1, %s983_s19  }
  0x17   : > { %p1107_p11 = por %p288_p8, %p80_p3  ;;  %s1344_s13 = sshll.u32 %s987_s20, 7 }
  0x18   : > { %s1357_s29 = scalar_select %p1103_p10, 1, 0 }
  0x19   : > { %s1358_s30 = scalar_select %p1107_p11, 1, 0 }
  0x1a   : > { %s1343_s14 = sshll.u32 %s1112_s12, 3  ;;  %s1360_s1 = sld [smem:[#allocation18_spill]] }
  0x1b   : > { %1359 = sst [smem:[#allocation17_spill]] %s1358_s30  ;;  %s363_s24 = scalar_lea.vmem [#allocation2], %s1343_s14 }
  0x1c   : > { %s370_s25 = sshll.u32 %s363_s24, 4  ;;  %p1127_p12 = pnand %p786_p9, %p1093_p5  ;;  %s1131_s25 = int_to_ptr.vmem [resolvable:$true] %s370_s25 }
  0x1d   : > { %s360_s15 = scalar_lea.sflag [#allocation3], %s1112_s12 }
  0x1e   : > { %p827_p2 = pneg %p1127_p12 }
  0x20   : > { %s1121_s22 = scalar_lea.hbm %s1360_s1, %s1344_s13  ;;  %s830_s14 = scalar_lea.hbm %s1360_s1, 640 }
  0x21   : > { %s825_s16 = scalar_lea.hbm %s1121_s22, 128  ;;  %p831_p5 = scmp.lt.u32.totalorder %s1121_s22, %s1360_s1 }
  0x22   : > { %p826_p1 = scmp.ne.s32.totalorder %s1121_s22, %s825_s16  ;;  %p832_p7 = scmp.lt.u32.totalorder %s830_s14, %s825_s16 }
  0x23   : > { %p834_p9 = scmp.lt.u32.totalorder %s825_s16, %s1121_s22 }
  0x24   : > { %p828_p3 = pnand %p827_p2, %p826_p1  ;;  %p833_p8 = por %p832_p7, %p831_p5 }
  0x26   : > { %p829_p4 = pneg %p828_p3  ;;  %p835_p13 = por %p834_p9, %p833_p8 }
  0x28   : > { %p836_p0 = pnand %p835_p13, %p829_p4 }
  0x2a   : > { %839 = shalt.err (!%p836_p0)
}
  0x2b   : > { %s840_s23 = scalar_lea.vmem %s1131_s25, 128  ;;  %s989_s27 = smov [#allocation2]  }
  0x2c   : > { %p841_p1 = scmp.ne.s32.totalorder %s1131_s25, %s840_s23  ;;  %s845_s24 = sshll.u32 %s989_s27, 4  ;;  %s846_s24 = int_to_ptr.vmem [resolvable:$false] %s845_s24 }
  0x2d   : > { %s847_s19 = scalar_lea.vmem %s846_s24, 256  ;;  %p848_p10 = scmp.lt.s32.totalorder %s1131_s25, %s846_s24 }
  0x2e   : > { %p843_p3 = pnand %p841_p1, %p827_p2  ;;  %p849_p5 = scmp.lt.s32.totalorder %s847_s19, %s840_s23 }
  0x30   : > { %p844_p11 = pneg %p843_p3  ;;  %p850_p7 = por %p849_p5, %p848_p10 }
  0x32   : > { %p851_p8 = pnand %p850_p7, %p844_p11 }
  0x34   : > { %854 = shalt.err (!%p851_p8)
}
  0x35   : > { %775 = dma.hbm_to_vmem [thread:$0]  (!%p1127_p12), %s1121_s22, 128, %s1131_s25, %s360_s15  }
  0x36   : > { %p1362_p13 = scmp.lt.s32.totalorder %s987_s20, 6  ;;  %p1363_p0 = scmp.ge.s32.totalorder %s987_s20, 1 }
  0x37   : > { %s1365_s23 = sshll.u32 %s987_s20, 7  ;;  %s1366_s24 = sshll.u32 %s1112_s12, 3 }
  0x38   : > { %p1165_p4 = pnand %p1363_p0, %p1362_p13  ;;  %s1174_s27 = scalar_lea.hbm %s1340_s9, %s1365_s23 }
  0x39   : > { %s388_s19 = scalar_lea.vmem [#allocation5], %s1366_s24  ;;  %s385_s22 = scalar_lea.sflag [#allocation6], %s1112_s12 }
  0x3a   : > { %s1364_s13 = scalar_select %p1165_p4, 1, 0 }
  0x3b   : > { %s395_s1 = sshll.u32 %s388_s19, 4  ;;  %s855_s25 = scalar_lea.hbm %s1174_s27, 128  ;;  %s396_s1 = int_to_ptr.vmem [resolvable:$true] %s395_s1 }
  0x3c   : > { %p856_p10 = scmp.ne.s32.totalorder %s1174_s27, %s855_s25  ;;  %s860_s23 = scalar_lea.hbm %s1340_s9, 640 }
  0x3d   : > { %p861_p1 = scmp.lt.u32.totalorder %s1174_s27, %s1340_s9  ;;  %p862_p3 = scmp.lt.u32.totalorder %s860_s23, %s855_s25 }
  0x3e   : > { %p858_p11 = pnand %p856_p10, %p827_p2  ;;  %p864_p7 = scmp.lt.u32.totalorder %s855_s25, %s1174_s27 }
  0x3f   : > { %p863_p5 = por %p862_p3, %p861_p1 }
  0x40   : > { %p859_p9 = pneg %p858_p11 }
  0x41   : > { %p865_p8 = por %p864_p7, %p863_p5 }
  0x43   : > { %p866_p13 = pnand %p865_p8, %p859_p9 }
  0x45   : > { %869 = shalt.err (!%p866_p13)
}
  0x46   : > { %s870_s12 = scalar_lea.vmem %s396_s1, 128  ;;  %s990_s24 = smov [#allocation5]  }
  0x47   : > { %p871_p0 = scmp.ne.s32.totalorder %s396_s1, %s870_s12  ;;  %s875_s30 = sshll.u32 %s990_s24, 4  ;;  %s876_s30 = int_to_ptr.vmem [resolvable:$false] %s875_s30 }
  0x48   : > { %s877_s19 = scalar_lea.vmem %s876_s30, 256  ;;  %p878_p6 = scmp.lt.s32.totalorder %s396_s1, %s876_s30 }
  0x49   : > { %p873_p10 = pnand %p871_p0, %p827_p2  ;;  %p879_p4 = scmp.lt.s32.totalorder %s877_s19, %s870_s12 }
  0x4b   : > { %p874_p11 = pneg %p873_p10  ;;  %p880_p1 = por %p879_p4, %p878_p6 }
  0x4d   : > { %p881_p3 = pnand %p880_p1, %p874_p11 }
  0x4f   : > { %884 = shalt.err (!%p881_p3)
}
  0x50   : > { %778 = dma.hbm_to_vmem [thread:$0]  (!%p1127_p12), %s1174_s27, 128, %s396_s1, %s385_s22  }
  0x51   : > { %p1367_p9 = scmp.ne.s32.totalorder %s1364_s13, 0 }
  0x52   : > { %s1201_s25 = sand.u32 (!%p1367_p9), 1, %s979_s18   ;;  %p1368_p6 = scmp.ne.s32.totalorder (!%p1367_p9), %s1356_s28, 0 }
  0x53   : > { %404 = sbr.rel (%p1367_p9) target bundleno = 291 (0x123), region = 60  ;;  %s1204_s15 = sshll.u32 (!%p1367_p9), %s1201_s25, 3 }
  0x54   : > { %s407_s23 = scalar_lea.sflag (!%p1367_p9), [#allocation3], %s1201_s25  ;;  %s410_s14 = scalar_lea.vmem (!%p1367_p9), [#allocation2], %s1204_s15 }
  0x5a   : > { %958 = dma.done.wait (%p1368_p6), %s407_s23, 128  }
  0x5b   : > { %960 = vsyncadd (%p1368_p6), %s407_s23, 4294967168  ;;  %s416_s1 = scalar_lea.sflag [#allocation6], %s1201_s25  ;;  %s419_s26 = scalar_lea.vmem [#allocation5], %s1204_s15 }
  0x5c   : > { %962 = dma.done.wait (%p1368_p6), %s416_s1, 128  }
  0x5d   : > { %964 = vsyncadd (%p1368_p6), %s416_s1, 4294967168  ;;  %v991_v0 = vmov 0   ;;  %v493_v1 = vld [vmem:[%s1335_s4] sm:$0xff]  ;;  %p476_p12 = scmp.lt.s32.totalorder %s1075_s21, 4  ;;  %v554_v45 = vld [vmem:[%s419_s26] sm:$0xff]  ;;  %s760_s19 = sshll.u32 %s1075_s21, 7 }
  0x5e   : > { %822 = vset.pattern.permute.xlu1 %v991_v0  ;;  %821 = vset.pattern.permute.xlu0 %v991_v0  ;;  %v491_v2 = vld [vmem:[%s1333_s2] sm:$0xff]  ;;  %s468_s23 = scalar_lea.vmem [#allocation7], %s1204_s15  ;;  %s475_s13 = scalar_lea.vmem [#allocation8], %s1204_s15 }
  0x5f   : > { %512 = vperm.xlu1 %822, %v493_v1   ;;  %499 = vperm.xlu0 %821, %v491_v2   ;;  %v494_v3 = vld [vmem:[%s1336_s5] sm:$0xff]  ;;  %s1238_s27 = scalar_select %p476_p12, %s1075_s21, 4 }
  0x60   : > { %v492_v4 = vld [vmem:[%s1334_s3] sm:$0xff]  ;;  %s582_s1 = sshll.u32 %s468_s23, 4  ;;  %s1259_s12 = scalar_lea.hbm %s1341_s10, %s760_s19  ;;  %s1261_s1 = int_to_ptr.vmem [resolvable:$true] %s582_s1 }
  0x61   : > { %v496_v5 = vld [vmem:[%s1338_s7] sm:$0xff]  ;;  %s756_s22 = sshll.u32 %s1238_s27, 3  ;;  %s595_s27 = sshll.u32 %s475_s13, 4  ;;  %s1268_s27 = int_to_ptr.vmem [resolvable:$true] %s595_s27 }
  0x62   : > { %v495_v6 = vld [vmem:[%s1337_s6] sm:$0xff]  ;;  %s479_s24 = scalar_lea.vmem %s1331_s0, %s756_s22  ;;  %s483_s30 = scalar_lea.vmem %s1339_s8, %s756_s22 }
  0x63   : > { %521 = vperm.xlu1 %822, %v494_v3   ;;  %505 = vperm.xlu0 %821, %v492_v4   ;;  %v484_v7 = vld [vmem:[%s479_s24] sm:$0xff]  ;;  %s1266_s24 = scalar_lea.hbm %s1342_s11, %s760_s19  ;;  %s564_s15 = scalar_lea.sflag [#allocation4], %s1201_s25 }
  0x64   : > { %v485_v8 = vld [vmem:[%s410_s14] sm:$0xff]  ;;  %v486_v9 = vmul.f32 %v484_v7, %v484_v7  ;;  %v489_v11 = vmul.f32 2.0, %v484_v7  ;;  %s885_s14 = scalar_lea.vmem %s1261_s1, 128  ;;  %p1369_p4 = scmp.ne.s32.totalorder %s1357_s29, 0 }
  0x65   : > { %v487_v10 = vmul.f32 %v485_v8, %v485_v8  ;;  %v553_v44 = vld [vmem:[%s483_s30] sm:$0xff]  ;;  %p886_p2 = scmp.ne.s32.totalorder %s1261_s1, %s885_s14  ;;  %s992_s28 = smov [#allocation7]  }
  0x66   : > { %v490_v15 = vmul.f32 %v489_v11, %v485_v8  ;;  %s889_s30 = sshll.u32 %s992_s28, 4  ;;  %s890_s30 = int_to_ptr.vmem [resolvable:$false] %s889_s30 }
  0x67   : > { %534 = vperm.xlu1 %822, %v496_v5   ;;  %527 = vperm.xlu0 %821, %v495_v6   ;;  %v488_v14 = vsub.f32 %v486_v9, %v487_v10  ;;  %p887_p5 = pnand %p886_p2, %p1369_p4  ;;  %s891_s22 = scalar_lea.vmem %s890_s30, 256 }
  0x68   : > { %p892_p8 = scmp.lt.s32.totalorder %s1261_s1, %s890_s30  ;;  %p893_p13 = scmp.lt.s32.totalorder %s891_s22, %s885_s14 }
  0x69   : > { %p888_p7 = pneg %p887_p5 }
  0x6a   : > { %p894_p0 = por %p893_p13, %p892_p8 }
  0x6c   : > { %p895_p10 = pnand %p894_p0, %p888_p7 }
  0xde   : > { %v500_v12 = vpop.permute.xlu0 %499  ;;  %v513_v13 = vpop.permute.xlu1 %512 }
  0xdf   : > { %v502_v17 = vmul.f32 %v500_v12, %v488_v14  ;;  %v516_v18 = vmul.f32 %v500_v12, %v490_v15 }
  0xe2   : > { %v506_v16 = vpop.permute.xlu0 %505  ;;  %v522_v21 = vpop.permute.xlu1 %521 }
  0xe3   : > { %v508_v19 = vmul.f32 %v506_v16, %v484_v7  ;;  %v517_v20 = vmul.f32 %v506_v16, %v485_v8  ;;  %v524_v24 = vmul.f32 %v522_v21, %v488_v14  ;;  %v538_v32 = vmul.f32 %v522_v21, %v490_v15 }
  0xe5   : > { %v509_v22 = vadd.f32 %v508_v19, %v502_v17  ;;  %v518_v23 = vadd.f32 %v517_v20, %v516_v18 }
  0xe6   : > { %v528_v25 = vpop.permute.xlu0 %527  ;;  %v535_v34 = vpop.permute.xlu1 %534 }
  0xe7   : > { %v515_v26 = vadd.f32 %v513_v13, %v509_v22  ;;  %v530_v27 = vmul.f32 %v528_v25, %v484_v7  ;;  %v542_v29 = vmul.f32 %v518_v23, %v518_v23  ;;  %v539_v33 = vmul.f32 %v528_v25, %v485_v8 }
  0xe9   : > { %v541_v28 = vmul.f32 %v515_v26, %v515_v26  ;;  %v531_v30 = vadd.f32 %v530_v27, %v524_v24  ;;  %v540_v36 = vadd.f32 %v539_v33, %v538_v32 }
  0xeb   : > { %v543_v31 = vadd.f32 %v542_v29, %v541_v28  ;;  %v537_v35 = vadd.f32 %v535_v34, %v531_v30  ;;  %v546_v39 = vmul.f32 %v540_v36, %v518_v23  ;;  %v549_v40 = vmul.f32 %v540_v36, %v515_v26 }
  0xed   : > { %823 = vrcp.f32 %v543_v31  ;;  %v545_v37 = vmul.f32 %v537_v35, %v515_v26  ;;  %v550_v38 = vmul.f32 %v537_v35, %v518_v23 }
  0xef   : > { %v547_v41 = vadd.f32 %v546_v39, %v545_v37  ;;  %v551_v42 = vsub.f32 %v549_v40, %v550_v38 }
  0xf7   : > { %v824_v43 = vpop.eup %823 }
  0xf8   : > { %v548_v46 = vmul.f32 %v824_v43, %v547_v41  ;;  %v552_v47 = vmul.f32 %v824_v43, %v551_v42 }
  0xfa   : > { %v555_v48 = vmul.f32 %v553_v44, %v548_v46  ;;  %v556_v49 = vmul.f32 %v554_v45, %v552_v47  ;;  %v559_v50 = vmul.f32 %v553_v44, %v552_v47  ;;  %v560_v51 = vmul.f32 %v554_v45, %v548_v46 }
  0xfc   : > { %v557_v52 = vsub.f32 %v555_v48, %v556_v49  ;;  %v561_v53 = vadd.f32 %v560_v51, %v559_v50 }
  0xfe   : > { %558 = vst [vmem:[%s468_s23] sm:$0xff] %v557_v52  ;;  %562 = vst [vmem:[%s475_s13] sm:$0xff] %v561_v53 }
  0xff   : > { %898 = shalt.err (!%p895_p10)
}
 0x100   : > { %s899_s19 = scalar_lea.hbm %s1259_s12, 128  ;;  %s903_s16 = scalar_lea.hbm %s1341_s10, 640 }
 0x101   : > { %p900_p11 = scmp.ne.s32.totalorder %s1259_s12, %s899_s19  ;;  %p904_p9 = scmp.lt.u32.totalorder %s1259_s12, %s1341_s10 }
 0x102   : > { %p905_p6 = scmp.lt.u32.totalorder %s903_s16, %s899_s19  ;;  %p907_p2 = scmp.lt.u32.totalorder %s899_s19, %s1259_s12 }
 0x103   : > { %p901_p1 = pnand %p900_p11, %p1369_p4 }
 0x104   : > { %p906_p12 = por %p905_p6, %p904_p9 }
 0x105   : > { %p902_p3 = pneg %p901_p1 }
 0x106   : > { %p908_p5 = por %p907_p2, %p906_p12 }
 0x108   : > { %p909_p7 = pnand %p908_p5, %p902_p3 }
 0x10a   : > { %912 = shalt.err (!%p909_p7)
}
 0x10b   : > { %768 = dma.vmem_to_hbm [thread:$0]  (%p1369_p4), %s1261_s1, 128, %s1259_s12, %s564_s15  }
 0x10c   : > { %s569_s14 = scalar_lea.sflag [#allocation9], %s1201_s25  ;;  %s913_s28 = scalar_lea.vmem %s1268_s27, 128 }
 0x10d   : > { %p914_p8 = scmp.ne.s32.totalorder %s1268_s27, %s913_s28  ;;  %s993_s30 = smov [#allocation8]  }
 0x10e   : > { %s917_s22 = sshll.u32 %s993_s30, 4  ;;  %s918_s22 = int_to_ptr.vmem [resolvable:$false] %s917_s22 }
 0x10f   : > { %p915_p13 = pnand %p914_p8, %p1369_p4  ;;  %s919_s19 = scalar_lea.vmem %s918_s22, 256 }
 0x110   : > { %p920_p10 = scmp.lt.s32.totalorder %s1268_s27, %s918_s22  ;;  %p921_p11 = scmp.lt.s32.totalorder %s919_s19, %s913_s28 }
 0x111   : > { %p916_p0 = pneg %p915_p13 }
 0x112   : > { %p922_p1 = por %p921_p11, %p920_p10 }
 0x114   : > { %p923_p3 = pnand %p922_p1, %p916_p0 }
 0x116   : > { %926 = shalt.err (!%p923_p3)
}
 0x117   : > { %s927_s25 = scalar_lea.hbm %s1266_s24, 128  ;;  %s931_s15 = scalar_lea.hbm %s1342_s11, 640 }
 0x118   : > { %p928_p9 = scmp.ne.s32.totalorder %s1266_s24, %s927_s25  ;;  %p932_p2 = scmp.lt.u32.totalorder %s1266_s24, %s1342_s11 }
 0x119   : > { %p933_p5 = scmp.lt.u32.totalorder %s931_s15, %s927_s25  ;;  %p935_p8 = scmp.lt.u32.totalorder %s927_s25, %s1266_s24 }
 0x11a   : > { %p929_p6 = pnand %p928_p9, %p1369_p4 }
 0x11b   : > { %p934_p7 = por %p933_p5, %p932_p2 }
 0x11c   : > { %p930_p12 = pneg %p929_p6 }
 0x11d   : > { %p936_p13 = por %p935_p8, %p934_p7 }
 0x11f   : > { %p937_p0 = pnand %p936_p13, %p930_p12 }
 0x121   : > { %940 = shalt.err (!%p937_p0)
}
 0x122   : > { %769 = dma.vmem_to_hbm [thread:$0]  (%p1369_p4), %s1268_s27, 128, %s1266_s24, %s569_s14  }
 0x123 PF: > { %s1370_s16 = sld [smem:[#allocation17_spill]]  ;;  %p787_p10 = scmp.ge.s32.totalorder %s987_s20, 2 }
 0x124   : > { %s607_s21 = sand.u32 1, %s975_s17  }
 0x125   : > { %s608_s26 = scalar_lea.sflag [#allocation4], %s607_s21 }
 0x129   : > { %p1371_p11 = scmp.ne.s32.totalorder %s1370_s16, 0 }
 0x12b   : > { %p780_p1 = pnand %p787_p10, %p1371_p11 }
 0x12d   : > { %966 = dma.done.wait (!%p780_p1), %s608_s26, 128  }
 0x12e   : > { %968 = vsyncadd (!%p780_p1), %s608_s26, 4294967168  ;;  %s617_s28 = scalar_lea.sflag [#allocation9], %s607_s21 }
 0x12f   : > { %970 = dma.done.wait (!%p780_p1), %s617_s28, 128  }
 0x130   : > { %972 = vsyncadd (!%p780_p1), %s617_s28, 4294967168  ;;  %s1372_s20 = sld [smem:[#allocation15_spill]]  ;;  %s1373_s29 = sld [smem:[#allocation14_spill]] }
 0x131   : > { %s1374_s19 = sld [smem:[#allocation16_spill]]  ;;  %s1375_s17 = smov %s979_s18 }
 0x136   : > { %p31_p4 = scmp.ge.s32.totalorder %s1372_s20, 7   ;;  %s1376_s18 = smov %s1373_s29 }
 0x138   :  { %33 = sbr.rel (!%p31_p4) target bundleno = 11 (0xb), region = 141 }
 0x13f   :  { %622 = vsyncpa [#allocation3], 1 }
 0x140   :  { %624 = vsyncpa [#allocation3 + $0x1], 1 }
 0x141   :  { %625 = vsyncpa [#allocation6], 1 }
 0x142   :  { %627 = vsyncpa [#allocation6 + $0x1], 1 }
 0x143   :  { %628 = vsyncpa [#allocation4], 1 }
 0x144   :  { %630 = vsyncpa [#allocation4 + $0x1], 1 }
 0x145   :  { %631 = vsyncpa [#allocation9], 1 }
 0x146   :  { %633 = vsyncpa [#allocation9 + $0x1], 1 }

</bundles_post_ra>
